<compile_context>
chip_gen: v5e
topology: v5e:2x2
jax: 0.10.0
libtpu: 0.0.40
codegen_flags: <defaults>
</compile_context>

<pallas_src>
import functools
import math

import jax
import jax.numpy as jnp
from jax.experimental import pallas as pl
from jax.experimental.pallas import tpu as pltpu

_MASK_VALUE = -1e30  # finite: avoids exp(-inf - (-inf)) = NaN on masked/padded rows


def _pick_tile(dim, target, aligns=(128, 8)):
    """Largest divisor of `dim` that is <= target and a multiple of an alignment.

    Falls back to the full dim, which is always a legal TPU block extent."""
    if dim <= target:
        return dim
    for align in aligns:
        t = (target // align) * align
        while t >= align:
            if dim % t == 0:
                return t
            t -= align
    return dim


# ----------------------------------------------------------------------------
# Kernel 1: tiled linear  out = x @ W + b  (K-reduction accumulator in VMEM)
# ----------------------------------------------------------------------------
def _linear_kernel(x_ref, w_ref, b_ref, o_ref, acc_ref):
    k = pl.program_id(2)

    @pl.when(k == 0)
    def _init():
        acc_ref[...] = jnp.zeros_like(acc_ref)

    acc_ref[...] += jnp.dot(x_ref[...], w_ref[...],
                            preferred_element_type=jnp.float32)

    @pl.when(k == pl.num_programs(2) - 1)
    def _finalize():
        # bias added once per output tile, not once per K-step
        o_ref[...] = (acc_ref[...] + b_ref[...].astype(jnp.float32)).astype(o_ref.dtype)


def linear(x2d, w, b, *, out_dtype=None, block_m=256, block_n=256, block_k=512):
    """x2d: (M, K), w: (K, N), b: (N,) -> (M, N)."""
    M, K = x2d.shape
    K2, N = w.shape
    assert K == K2 and b.shape == (N,)
    if out_dtype is None:
        out_dtype = x2d.dtype

    tm = _pick_tile(M, block_m)
    tn = _pick_tile(N, block_n)
    tk = _pick_tile(K, block_k)
    grid = (M // tm, N // tn, K // tk)

    return pl.pallas_call(
        _linear_kernel,
        out_shape=jax.ShapeDtypeStruct((M, N), out_dtype),
        grid_spec=pltpu.PrefetchScalarGridSpec(
            num_scalar_prefetch=0,
            grid=grid,
            in_specs=[
                pl.BlockSpec((tm, tk), lambda i, j, k: (i, k)),
                pl.BlockSpec((tk, tn), lambda i, j, k: (k, j)),
                pl.BlockSpec((1, tn), lambda i, j, k: (0, j)),
            ],
            out_specs=pl.BlockSpec((tm, tn), lambda i, j, k: (i, j)),
            scratch_shapes=[pltpu.VMEM((tm, tn), jnp.float32)],
        ),
        compiler_params=pltpu.CompilerParams(
            dimension_semantics=("parallel", "parallel", "arbitrary")),
    )(x2d, w, b.reshape(1, N))


# ----------------------------------------------------------------------------
# Kernel 2: flash-style causal attention with online softmax
# ----------------------------------------------------------------------------
def _flash_attn_kernel(q_ref, k_ref, v_ref, o_ref, m_ref, l_ref, acc_ref,
                       *, sm_scale, block_q, block_k):
    qi = pl.program_id(2)
    ki = pl.program_id(3)

    @pl.when(ki == 0)
    def _init():
        m_ref[...] = jnp.full_like(m_ref, _MASK_VALUE)
        l_ref[...] = jnp.zeros_like(l_ref)
        acc_ref[...] = jnp.zeros_like(acc_ref)

    # Causal block skipping: KV blocks strictly above the diagonal contribute
    # nothing — skip their compute entirely.
    @pl.when(ki <= qi)
    def _compute():
        q = q_ref[0, 0] * sm_scale              # fold 1/sqrt(D) into q (tq*D ops)
        k = k_ref[0, 0]
        v = v_ref[0, 0]

        # Contract on D; K consumed in its native (tk, D) layout (no transpose).
        s = jax.lax.dot_general(q, k, (((1,), (1,)), ((), ())),
                                preferred_element_type=jnp.float32)  # (tq, tk)

        rows = qi * block_q + jax.lax.broadcasted_iota(jnp.int32, s.shape, 0)
        cols = ki * block_k + jax.lax.broadcasted_iota(jnp.int32, s.shape, 1)
        s = jnp.where(cols <= rows, s, _MASK_VALUE)

        m_prev = m_ref[...]
        m_new = jnp.maximum(m_prev, jnp.max(s, axis=-1, keepdims=True))
        alpha = jnp.exp(m_prev - m_new)
        p = jnp.exp(s - m_new)

        l_ref[...] = alpha * l_ref[...] + jnp.sum(p, axis=-1, keepdims=True)
        acc_ref[...] = alpha * acc_ref[...] + jnp.dot(
            p.astype(v.dtype), v, preferred_element_type=jnp.float32)
        m_ref[...] = m_new

    @pl.when(ki == pl.num_programs(3) - 1)
    def _finalize():
        inv_l = pl.reciprocal(l_ref[...], approx=True)   # EUP slot, off VALU path
        o_ref[0, 0] = (acc_ref[...] * inv_l).astype(o_ref.dtype)


def causal_attention(q, k, v, *, block_q=256, block_k=256):
    """q, k, v: (B, H, T, D) -> (B, H, T, D) with causal masking."""
    B, H, T, D = q.shape
    assert k.shape == v.shape == (B, H, T, D)

    t = _pick_tile(T, min(block_q, block_k))
    tq = tk = t                      # equal tiles keep diagonal-block logic simple
    nq, nk = T // tq, T // tk
    sm_scale = 1.0 / math.sqrt(D)

    kernel = functools.partial(_flash_attn_kernel, sm_scale=sm_scale,
                               block_q=tq, block_k=tk)

    q_spec = pl.BlockSpec((1, 1, tq, D), lambda b, h, qi, ki: (b, h, qi, 0))
    # Clamp ki so skipped (fully masked) blocks map to the block that is already
    # resident in VMEM -> no K/V HBM traffic for the upper triangle.
    kv_spec = pl.BlockSpec((1, 1, tk, D),
                           lambda b, h, qi, ki: (b, h, jnp.minimum(ki, qi), 0))

    return pl.pallas_call(
        kernel,
        out_shape=jax.ShapeDtypeStruct((B, H, T, D), q.dtype),
        grid_spec=pltpu.PrefetchScalarGridSpec(
            num_scalar_prefetch=0,
            grid=(B, H, nq, nk),
            in_specs=[q_spec, kv_spec, kv_spec],
            out_specs=pl.BlockSpec((1, 1, tq, D),
                                   lambda b, h, qi, ki: (b, h, qi, 0)),
            scratch_shapes=[
                pltpu.VMEM((tq, 1), jnp.float32),    # running row max m
                pltpu.VMEM((tq, 1), jnp.float32),    # running row sum l
                pltpu.VMEM((tq, D), jnp.float32),    # f32 output accumulator
            ],
        ),
        compiler_params=pltpu.CompilerParams(
            dimension_semantics=("parallel", "parallel", "parallel", "arbitrary")),
    )(q, k, v)


# ----------------------------------------------------------------------------
# Full module forward (glue in plain JAX, hot paths in Pallas)
# ----------------------------------------------------------------------------
def causal_self_attention(x, params, n_head, *, compute_dtype=None):
    """compute_dtype=jnp.bfloat16 runs the MXU in bf16 with f32 accumulation."""
    B, T, C = x.shape
    D = C // n_head
    out_dtype = x.dtype

    if compute_dtype is not None:
        x = x.astype(compute_dtype)
        params = {k_: v_.astype(compute_dtype) for k_, v_ in params.items()}

    # qkv projection (tiled Pallas matmul)
    qkv = linear(x.reshape(B * T, C), params["w_attn"], params["b_attn"])
    qkv = qkv.reshape(B, T, 3 * C)
    q, k, v = jnp.split(qkv, 3, axis=2)

    # Head split/merge transposes are left to XLA (pure layout plumbing).
    # TODO(synk): fold the (B,T,H,D)<->(B,H,T,D) transposes into BlockSpec index
    # maps / a fused QKV out_spec once head_dim-aligned (128-lane) blocks apply.
    q = q.reshape(B, T, n_head, D).transpose(0, 2, 1, 3)
    k = k.reshape(B, T, n_head, D).transpose(0, 2, 1, 3)
    v = v.reshape(B, T, n_head, D).transpose(0, 2, 1, 3)

    # flash-style causal attention (Pallas)
    y = causal_attention(q, k, v)                          # (B, H, T, D)

    # merge heads and output projection (tiled Pallas matmul)
    y = y.transpose(0, 2, 1, 3).reshape(B * T, C)
    out = linear(y, params["w_proj"], params["b_proj"],
                 out_dtype=out_dtype).reshape(B, T, C)
    return out


# ----------------------------------------------------------------------------
# Pure-JAX reference for a sanity check
# ----------------------------------------------------------------------------
def reference(x, params, n_head):
    B, T, C = x.shape
    D = C // n_head
    qkv = x @ params["w_attn"] + params["b_attn"]
    q, k, v = jnp.split(qkv, 3, axis=2)
    q = q.reshape(B, T, n_head, D).transpose(0, 2, 1, 3)
    k = k.reshape(B, T, n_head, D).transpose(0, 2, 1, 3)
    v = v.reshape(B, T, n_head, D).transpose(0, 2, 1, 3)
    s = jnp.einsum("bhqd,bhkd->bhqk", q, k) / math.sqrt(D)
    mask = jnp.tril(jnp.ones((T, T), dtype=bool))
    s = jnp.where(mask, s, -jnp.inf)
    p = jax.nn.softmax(s, axis=-1)
    y = jnp.einsum("bhqk,bhkd->bhqd", p, v)
    y = y.transpose(0, 2, 1, 3).reshape(B, T, C)
    return y @ params["w_proj"] + params["b_proj"]


if __name__ == "__main__":
    # Small config consistent with the module: n_embedding_dimensions % n_head == 0
    B, T, C, n_head = 2, 8, 32, 4

    key = jax.random.PRNGKey(0)
    k1, k2, k3, k4, k5 = jax.random.split(key, 5)

    scale_attn = 1.0 / math.sqrt(C)
    params = {
        "w_attn": jax.random.uniform(k1, (C, 3 * C), jnp.float32,
                                     -scale_attn, scale_attn),
        "b_attn": jax.random.uniform(k2, (3 * C,), jnp.float32,
                                     -scale_attn, scale_attn),
        "w_proj": jax.random.uniform(k3, (C, C), jnp.float32,
                                     -scale_attn, scale_attn),
        "b_proj": jax.random.uniform(k4, (C,), jnp.float32,
                                     -scale_attn, scale_attn),
    }
    x = jax.random.normal(k5, (B, T, C), jnp.float32)

    ref = reference(x, params, n_head)

    # f32 path (strict correctness check)
    out = causal_self_attention(x, params, n_head)
    out = jax.block_until_ready(out)
    assert out.shape == (B, T, C)
    assert jnp.allclose(out, ref, atol=2e-3, rtol=2e-3), "f32 mismatch vs reference"

    # bf16 MXU path (f32 accumulation inside the kernels), looser tolerance
    out_bf16 = causal_self_attention(x, params, n_head, compute_dtype=jnp.bfloat16)
    out_bf16 = jax.block_until_ready(out_bf16)
    assert jnp.allclose(out_bf16, ref, atol=5e-2, rtol=5e-2), "bf16 mismatch vs reference"

    print("KERNEL_OK")
</pallas_src>

<mosaic_0001>
module attributes {stable_mosaic.version = 11 : i64} {
  func.func @_linear_kernel(%arg0: i32, %arg1: i32, %arg2: i32, %arg3: memref<16x32xf32, #tpu.memory_space<vmem>>, %arg4: memref<32x96xf32, #tpu.memory_space<vmem>>, %arg5: memref<1x96xf32, #tpu.memory_space<vmem>>, %arg6: memref<16x96xf32, #tpu.memory_space<vmem>>, %arg7: memref<16x96xf32, #tpu.memory_space<vmem>>) attributes {dimension_semantics = [#tpu.dimension_semantics<parallel>, #tpu.dimension_semantics<parallel>, #tpu.dimension_semantics<arbitrary>], iteration_bounds = array<i64: 1, 1, 1>, scalar_prefetch = 0 : i64, scratch_operands = 1 : i64, tpu.core_type = #tpu.core_type<tc>, window_params = [{transform_indices = @transform_0, window_bounds = array<i64: 16, 32>}, {transform_indices = @transform_1, window_bounds = array<i64: 32, 96>}, {transform_indices = @transform_2, window_bounds = array<i64: 1, 96>}, {transform_indices = @transform_3, window_bounds = array<i64: 16, 96>}]} {
    %c0_i32 = arith.constant 0 : i32
    %0 = arith.cmpi eq, %arg2, %c0_i32 : i32
    %1 = arith.extui %0 : i1 to i32
    %c0_i32_0 = arith.constant 0 : i32
    %2 = arith.cmpi ne, %1, %c0_i32_0 : i32
    scf.if %2 {
      %cst_10 = arith.constant 0.000000e+00 : f32
      %12 = vector.broadcast %cst_10 : f32 to vector<16x96xf32>
      %c0_11 = arith.constant 0 : index
      %c0_12 = arith.constant 0 : index
      %13 = vector.load %arg7[%c0_11, %c0_12] : memref<16x96xf32, #tpu.memory_space<vmem>>, vector<16x96xf32>
      tpu.vector_store %arg7[%c0_11, %c0_12], %12 {strides = array<i32>} : memref<16x96xf32, #tpu.memory_space<vmem>>, vector<16x96xf32>,
    } else {
    }
    %c0 = arith.constant 0 : index
    %c0_1 = arith.constant 0 : index
    %3 = vector.load %arg7[%c0, %c0_1] : memref<16x96xf32, #tpu.memory_space<vmem>>, vector<16x96xf32>
    %c0_2 = arith.constant 0 : index
    %c0_3 = arith.constant 0 : index
    %4 = vector.load %arg3[%c0_2, %c0_3] : memref<16x32xf32, #tpu.memory_space<vmem>>, vector<16x32xf32>
    %c0_4 = arith.constant 0 : index
    %c0_5 = arith.constant 0 : index
    %5 = vector.load %arg4[%c0_4, %c0_5] : memref<32x96xf32, #tpu.memory_space<vmem>>, vector<32x96xf32>
    %cst = arith.constant dense<0.000000e+00> : vector<16x96xf32>
    %6 = tpu.matmul %4, %5, %cst {dimension_numbers = #tpu.dot_dimension_numbers<[1], [0], [0], [1], [0, 0, 1, 1], [], []>} : vector<16x32xf32>, vector<32x96xf32>, vector<16x96xf32> -> vector<16x96xf32>
    %7 = arith.addf %3, %6 : vector<16x96xf32>
    %c0_6 = arith.constant 0 : index
    %c0_7 = arith.constant 0 : index
    %8 = vector.load %arg7[%c0_6, %c0_7] : memref<16x96xf32, #tpu.memory_space<vmem>>, vector<16x96xf32>
    tpu.vector_store %arg7[%c0_6, %c0_7], %7 {strides = array<i32>} : memref<16x96xf32, #tpu.memory_space<vmem>>, vector<16x96xf32>,
    %c0_i32_8 = arith.constant 0 : i32
    %9 = arith.cmpi eq, %arg2, %c0_i32_8 : i32
    %10 = arith.extui %9 : i1 to i32
    %c0_i32_9 = arith.constant 0 : i32
    %11 = arith.cmpi ne, %10, %c0_i32_9 : i32
    scf.if %11 {
      %c0_10 = arith.constant 0 : index
      %c0_11 = arith.constant 0 : index
      %12 = vector.load %arg7[%c0_10, %c0_11] : memref<16x96xf32, #tpu.memory_space<vmem>>, vector<16x96xf32>
      %c0_12 = arith.constant 0 : index
      %c0_13 = arith.constant 0 : index
      %13 = vector.load %arg5[%c0_12, %c0_13] : memref<1x96xf32, #tpu.memory_space<vmem>>, vector<1x96xf32>
      %14 = vector.broadcast %13 : vector<1x96xf32> to vector<16x96xf32>
      %15 = arith.addf %12, %14 : vector<16x96xf32>
      %c0_14 = arith.constant 0 : index
      %c0_15 = arith.constant 0 : index
      %16 = vector.load %arg6[%c0_14, %c0_15] : memref<16x96xf32, #tpu.memory_space<vmem>>, vector<16x96xf32>
      tpu.vector_store %arg6[%c0_14, %c0_15], %15 {strides = array<i32>} : memref<16x96xf32, #tpu.memory_space<vmem>>, vector<16x96xf32>,
    } else {
    }
    return
  }
  func.func @transform_0(%arg0: i32, %arg1: i32, %arg2: i32) -> (i32, i32) {
    %c0_i32 = arith.constant 0 : i32
    return %arg0, %arg2 : i32, i32
  }
  func.func @transform_1(%arg0: i32, %arg1: i32, %arg2: i32) -> (i32, i32) {
    %c0_i32 = arith.constant 0 : i32
    return %arg2, %arg1 : i32, i32
  }
  func.func @transform_2(%arg0: i32, %arg1: i32, %arg2: i32) -> (i32, i32) {
    %c0_i32 = arith.constant 0 : i32
    %c0_i32_0 = arith.constant 0 : i32
    return %c0_i32, %arg1 : i32, i32
  }
  func.func @transform_3(%arg0: i32, %arg1: i32, %arg2: i32) -> (i32, i32) {
    %c0_i32 = arith.constant 0 : i32
    return %arg0, %arg1 : i32, i32
  }
}

</mosaic_0001>

<bundles_post_ra>
// kernel: tpu_custom_call.1
= control target key start
LH: loop header
LB: loop body
LE: loop exit
PB: predicated region body
PF: predicated region fallthrough
CT: control target
= control target key end

     0   :  { %8 = vsyncpa [#allocation4], 0  ;;  %s274_s0 = inlined_call_operand.hbm [shape: f32[16,32], index: 0, kind: input, shape index: {}]   ;;  %s275_s1 = inlined_call_operand.hbm [shape: f32[32,96], index: 1, kind: input, shape index: {}]   ;;  %s276_s2 = inlined_call_operand.vmem [shape: f32[1,96], index: 2, kind: input, shape index: {}]   ;;  %s277_s3 = inlined_call_operand.hbm [shape: f32[16,96], index: 3, kind: output, shape index: {}]  }
   0x1   :  { %9 = vsyncpa [#allocation7], 0 }
   0x2   :  { %10 = vsyncpa [#allocation5], 0  ;;  %s15_s14 = sshll.u32 %s274_s0, 4  ;;  %s221_s15 = smov [#allocation3]   ;;  %s16_s14 = int_to_ptr.hbm [resolvable:$true] %s15_s14 }
   0x3   :  { %s17_s16 = sshll.u32 %s221_s15, 4  ;;  %s28_s19 = sshll.u32 %s275_s1, 4  ;;  %s18_s16 = int_to_ptr.vmem [resolvable:$true] %s17_s16  ;;  %s29_s19 = int_to_ptr.hbm [resolvable:$true] %s28_s19 }
   0x4   :  { %s222_s20 = smov 128   ;;  %s223_s21 = smov 8  }
   0x5   :  { %23 = dma.hbm_to_vmem [thread:$0]  %s16_s14, 256, %s18_s16, [#allocation4], %s222_s20, %s222_s20, %s223_s21  }
   0x6   :  { %s224_s22 = smov [#allocation6]  }
   0x7   :  { %s30_s23 = sshll.u32 %s224_s22, 4  ;;  %s31_s23 = int_to_ptr.vmem [resolvable:$true] %s30_s23 }
   0x8   :  { %36 = dma.hbm_to_vmem [thread:$0]  %s29_s19, 512, %s31_s23, [#allocation7], %s222_s20, %s222_s20, %s223_s21  }
   0x9   :  { %215 = dma.done.wait [#allocation4], 256  }
   0xa   :  { %216 = vsyncadd [#allocation4], 4294967040 }
   0xb   :  { %217 = dma.done.wait [#allocation7], 512  }
   0xc   :  { %218 = vsyncadd [#allocation7], 4294966784  ;;  %vm51_vm0 = vcmask 785408   ;;  %v225_v0 = vmov 0.0   ;;  %v61_v1 = vld [vmem:[#allocation6 + $0x18] sm:$0xff]  ;;  %v60_v2 = vld [vmem:[#allocation6 + $0x10] sm:$0xff] }
   0xd   :  { %52 = vst.msk [vmem:[#allocation2] sm:$0xff] %vm51_vm0, %v225_v0  ;;  %81 = vmatpush.msra.mxu0 %v61_v1  ;;  %132 = vmatpush.msra.mxu1 %v61_v1  ;;  %v59_v3 = vld [vmem:[#allocation6 + $0x8] sm:$0xff]  ;;  %v58_v4 = vld [vmem:[#allocation6] sm:$0xff]  ;;  %v56_v5 = vld [vmem:[#allocation3] sm:$0xff]  ;;  %vm62_vm1 = vcmask 261120   ;;  %s226_s24 = smov [#allocation8]  }
   0xe   :  { %53 = vst.msk [vmem:[#allocation2 + $0x8] sm:$0xff] %vm51_vm0, %v225_v0  ;;  %v57_v6 = vld [vmem:[#allocation3 + $0x8] sm:$0xff]  ;;  %v142_v13 = vld [vmem:[%s276_s2] ss:$0 sm:$0xff]  ;;  %s114_s25 = sshll.u32 %s226_s24, 4  ;;  %s116_s28 = sshll.u32 %s277_s3, 4  ;;  %s115_s25 = int_to_ptr.vmem [resolvable:$true] %s114_s25  ;;  %s117_s28 = int_to_ptr.hbm [resolvable:$true] %s116_s28 }
   0xf   :  { %82 = vmatpush.msra.mxu0 %v60_v2  ;;  %133 = vmatpush.msra.mxu1 %v60_v2 }
  0x11   :  { %83 = vmatpush.msra.mxu0 %v59_v3  ;;  %134 = vmatpush.msra.mxu1 %v59_v3 }
  0x13   :  { %84 = vmatpush.msra.mxu0 %v58_v4  ;;  %135 = vmatpush.msra.mxu1 %v58_v4 }
  0x14   :  { %130 = vmatmul.msk.f32.vlgmr.msra.gmra.mxu0 %vm62_vm1, %v56_v5  ;;  %131 = vmatmul.msk.f32.vlgmr.msra.gmra.mxu1 %vm62_vm1, %v57_v6  ;;  %v54_v7 = vld [vmem:[#allocation2] sm:$0xff] }
  0x15   :  { %v55_v8 = vld [vmem:[#allocation2 + $0x8] sm:$0xff] }
  0x91   :  { %v86_v9 = vpop.f32.mrf.mxu0  ;;  %v89_v10 = vpop.f32.mrf.mxu1 }
  0x92   :  { %v92_v11 = vadd.f32 %v86_v9, %v54_v7  ;;  %v93_v12 = vadd.f32 %v89_v10, %v55_v8 }
  0x94   :  { %95 = vst.msk [vmem:[#allocation2] sm:$0xff] %vm51_vm0, %v92_v11 }
  0x95   :  { %96 = vst.msk [vmem:[#allocation2 + $0x8] sm:$0xff] %vm51_vm0, %v93_v12 }
  0x9b   :  { %v100_v14 = vld [vmem:[#allocation2] sm:$0xff] }
  0x9c   :  { %v101_v15 = vld [vmem:[#allocation2 + $0x8] sm:$0xff]  ;;  %v106_v16 = vadd.f32 %v142_v13, %v100_v14 }
  0x9d   :  { %v107_v17 = vadd.f32 %v142_v13, %v101_v15 }
  0x9e   :  { %108 = vst.msk [vmem:[#allocation8] sm:$0xff] %vm51_vm0, %v106_v16 }
  0x9f   :  { %109 = vst.msk [vmem:[#allocation8 + $0x8] sm:$0xff] %vm51_vm0, %v107_v17 }
  0xa0   :  { %122 = dma.vmem_to_hbm [thread:$0]  %s115_s25, 256, %s117_s28, [#allocation5], %s222_s20, %s222_s20, %s223_s21  }
  0xa1   :  { %219 = dma.done.wait [#allocation5], 256  }
  0xa2   :  { %220 = vsyncadd [#allocation5], 4294967040 }
  0xa3   :  { %127 = vsyncpa [#allocation4], 1 }
  0xa4   :  { %128 = vsyncpa [#allocation7], 1 }
  0xa5   :  { %129 = vsyncpa [#allocation5], 1 }

</bundles_post_ra>
